<compile_context>
chip_gen: v7x
topology: tpu7x:2x2x1
jax: 0.10.0
libtpu: 0.0.40
codegen_flags: <defaults>
</compile_context>

<pallas_src>
import math
import functools

import jax
import jax.numpy as jnp
from jax.experimental import pallas as pl
from jax.experimental.pallas import tpu as pltpu


def _round_up(x, m):
    return ((x + m - 1) // m) * m


def _cdiv(a, b):
    return -(-a // b)


# ----------------------------------------------------------------------------
# In-kernel helper: moving-average decomposition on a [L, D] slab
# ----------------------------------------------------------------------------

def _moving_avg_decomp(s, kernel_size):
    """series_decomp on one batch: edge-replicated k-tap moving average (VPU).
    s: [L, D] f32 -> (season, trend)."""
    L, D = s.shape
    pad = (kernel_size - 1) // 2
    sp = jnp.concatenate([s[0:1]] * pad + [s] + [s[L - 1:L]] * pad, axis=0)
    acc = sp[0:L]
    for j in range(1, kernel_size):
        acc = acc + sp[j:j + L]
    trend = acc * (1.0 / kernel_size)
    return s - trend, trend


# ----------------------------------------------------------------------------
# Pallas kernels
# ----------------------------------------------------------------------------

def _matmul_bias_kernel(a_ref, w_ref, b_ref, o_ref):
    a = a_ref[...].astype(jnp.bfloat16)                      # bf16 operands,
    o_ref[...] = (                                           # f32 accumulate
        jnp.dot(a, w_ref[...], preferred_element_type=jnp.float32)
        + b_ref[...]
    )


def pallas_linear(x, w, b=None, tile_m=256):
    """x: [M, K] f32, w: [K, N] bf16, b: [N] f32 or None -> [M, N] f32."""
    M, K = x.shape
    N = w.shape[1]
    if b is None:
        b = jnp.zeros((N,), jnp.float32)
    # >=2 parallel grid steps when M allows (v7x has 2 TCs), rows multiple of 8,
    # pad at most tm-1 rows (grid = cdiv(M, tm)).
    tm = min(tile_m, _round_up(max(8, _cdiv(M, 2)), 8))
    grid_m = _cdiv(M, tm)
    Mp = grid_m * tm
    x_p = x if Mp == M else jnp.pad(x, ((0, Mp - M), (0, 0)))
    out = pl.pallas_call(
        _matmul_bias_kernel,
        grid=(grid_m,),
        in_specs=[
            pl.BlockSpec((tm, K), lambda i: (i, 0)),
            pl.BlockSpec((K, N), lambda i: (0, 0)),
            pl.BlockSpec((1, N), lambda i: (0, 0)),
        ],
        out_specs=pl.BlockSpec((tm, N), lambda i: (i, 0)),
        out_shape=jax.ShapeDtypeStruct((Mp, N), jnp.float32),
        compiler_params=pltpu.CompilerParams(dimension_semantics=("parallel",)),
    )(x_p, w, b.reshape(1, N).astype(jnp.float32))
    return out if Mp == M else out[:M]


def _decomp_kernel(x_ref, season_ref, trend_ref, *, kernel_size):
    B = x_ref.shape[0]
    for b in range(B):
        season, trend = _moving_avg_decomp(x_ref[b].astype(jnp.float32),
                                           kernel_size)
        season_ref[b] = season
        trend_ref[b] = trend


def series_decomp(x, kernel_size):
    """series_decomp(moving_avg(kernel_size, stride=1)) -> (season, trend)."""
    assert kernel_size % 2 == 1, "Autoformer series_decomp assumes odd moving_avg"
    B, L, C = x.shape
    return pl.pallas_call(
        functools.partial(_decomp_kernel, kernel_size=kernel_size),
        grid=(1,),
        in_specs=[pl.BlockSpec((B, L, C), lambda i: (0, 0, 0))],
        out_specs=(pl.BlockSpec((B, L, C), lambda i: (0, 0, 0)),
                   pl.BlockSpec((B, L, C), lambda i: (0, 0, 0))),
        out_shape=(jax.ShapeDtypeStruct((B, L, C), jnp.float32),) * 2,
    )(x)


def _proj_res_decomp_kernel(v_ref, r_ref, w_ref, b_ref,
                            season_ref, trend_ref, *, kernel_size):
    """Fused: s = residual + attn_val @ wo + bo ; (season, trend) = decomp(s)."""
    B, L, D = r_ref.shape
    w = w_ref[...]
    bias = b_ref[...]
    for b in range(B):
        s = (jnp.dot(v_ref[b].astype(jnp.bfloat16), w,
                     preferred_element_type=jnp.float32)
             + bias + r_ref[b])
        season, trend = _moving_avg_decomp(s, kernel_size)
        season_ref[b] = season
        trend_ref[b] = trend


def proj_res_decomp(attn_val, residual, w, b, kernel_size):
    B, L, D = residual.shape
    return pl.pallas_call(
        functools.partial(_proj_res_decomp_kernel, kernel_size=kernel_size),
        grid=(1,),
        in_specs=[
            pl.BlockSpec((B, L, D), lambda i: (0, 0, 0)),
            pl.BlockSpec((B, L, D), lambda i: (0, 0, 0)),
            pl.BlockSpec((D, D), lambda i: (0, 0)),
            pl.BlockSpec((1, D), lambda i: (0, 0)),
        ],
        out_specs=(pl.BlockSpec((B, L, D), lambda i: (0, 0, 0)),
                   pl.BlockSpec((B, L, D), lambda i: (0, 0, 0))),
        out_shape=(jax.ShapeDtypeStruct((B, L, D), jnp.float32),) * 2,
    )(attn_val, residual, w, b.reshape(1, D).astype(jnp.float32))


def _ffn_res_decomp_kernel(x_ref, w1_ref, w2_ref,
                           season_ref, trend_ref, *, kernel_size):
    """Fused: y = relu(x @ w1) @ w2 ; (season, trend) = decomp(x + y)."""
    B, L, D = x_ref.shape
    w1 = w1_ref[...]
    w2 = w2_ref[...]
    for b in range(B):
        xb = x_ref[b]
        h = jnp.dot(xb.astype(jnp.bfloat16), w1,
                    preferred_element_type=jnp.float32)
        h = jnp.maximum(h, 0.0).astype(jnp.bfloat16)          # activation = relu
        y = jnp.dot(h, w2, preferred_element_type=jnp.float32)
        season, trend = _moving_avg_decomp(xb + y, kernel_size)
        season_ref[b] = season
        trend_ref[b] = trend


def ffn_res_decomp(x, w1, w2, kernel_size):
    B, L, D = x.shape
    F_ = w1.shape[1]
    return pl.pallas_call(
        functools.partial(_ffn_res_decomp_kernel, kernel_size=kernel_size),
        grid=(1,),
        in_specs=[
            pl.BlockSpec((B, L, D), lambda i: (0, 0, 0)),
            pl.BlockSpec((D, F_), lambda i: (0, 0)),
            pl.BlockSpec((F_, D), lambda i: (0, 0)),
        ],
        out_specs=(pl.BlockSpec((B, L, D), lambda i: (0, 0, 0)),
                   pl.BlockSpec((B, L, D), lambda i: (0, 0, 0))),
        out_shape=(jax.ShapeDtypeStruct((B, L, D), jnp.float32),) * 2,
    )(x, w1, w2)


def _my_layernorm_kernel(x_ref, g_ref, b_ref, o_ref):
    x = x_ref[...]                                            # [B, L, D]
    mu = jnp.mean(x, axis=-1, keepdims=True)
    xc = x - mu
    var = jnp.mean(xc * xc, axis=-1, keepdims=True)
    xhat = xc * jax.lax.rsqrt(var + 1e-5) * g_ref[...] + b_ref[...]
    o_ref[...] = xhat - jnp.mean(xhat, axis=1, keepdims=True)   # subtract seq-mean


def my_layernorm(x, gamma, beta):
    B, L, D = x.shape
    return pl.pallas_call(
        _my_layernorm_kernel,
        grid=(1,),
        in_specs=[
            pl.BlockSpec((B, L, D), lambda i: (0, 0, 0)),
            pl.BlockSpec((1, D), lambda i: (0, 0)),
            pl.BlockSpec((1, D), lambda i: (0, 0)),
        ],
        out_specs=pl.BlockSpec((B, L, D), lambda i: (0, 0, 0)),
        out_shape=jax.ShapeDtypeStruct((B, L, D), jnp.float32),
    )(x, gamma.reshape(1, D).astype(jnp.float32),
      beta.reshape(1, D).astype(jnp.float32))


def _embed_kernel(x_ref, mark_ref, tokw_ref, timew_ref, o_ref):
    # DataEmbedding_wo_pos: circular conv(k=3) token embedding + time linear,
    # fused.  Circular pad built in VMEM; conv as a SUM of 3 dots (no lane
    # concat / cross-lane shuffle).  Dropout: identity (eval).
    B, L, Cin = x_ref.shape
    tok_w = tokw_ref[...]
    time_w = timew_ref[...]
    for b in range(B):
        xb = x_ref[b]                                         # [L, Cin]
        xp = jnp.concatenate([xb[L - 1:L], xb, xb[0:1]], axis=0)   # circular pad 1
        val = jnp.dot(xp[0:L], tok_w[0:Cin, :],
                      preferred_element_type=jnp.float32)
        for k in range(1, 3):
            val = val + jnp.dot(xp[k:k + L], tok_w[k * Cin:(k + 1) * Cin, :],
                                preferred_element_type=jnp.float32)
        t = jnp.dot(mark_ref[b], time_w, preferred_element_type=jnp.float32)
        o_ref[b] = val + t


def data_embedding(x, x_mark, p):
    """TokenEmbedding(conv k=3 circular, no bias) + TimeFeatureEmbedding (no bias)."""
    B, L, Cin = x.shape
    Dm = x_mark.shape[-1]
    D = p["tok_w"].shape[1]
    return pl.pallas_call(
        _embed_kernel,
        grid=(1,),
        in_specs=[
            pl.BlockSpec((B, L, Cin), lambda i: (0, 0, 0)),
            pl.BlockSpec((B, L, Dm), lambda i: (0, 0, 0)),
            pl.BlockSpec((3 * Cin, D), lambda i: (0, 0)),
            pl.BlockSpec((Dm, D), lambda i: (0, 0)),
        ],
        out_specs=pl.BlockSpec((B, L, D), lambda i: (0, 0, 0)),
        out_shape=jax.ShapeDtypeStruct((B, L, D), jnp.float32),
    )(x, x_mark, p["tok_w"], p["time_w"])


# ----------------------------------------------------------------------------
# JAX glue: autocorrelation, encoder/decoder layers
# ----------------------------------------------------------------------------

def circular_conv3_jax(x, w):
    """Conv1d(k=3, padding=1, circular, no bias), NWC; narrow output -> plain XLA."""
    B, L, C = x.shape
    xpad = jnp.concatenate([x[:, -1:, :], x, x[:, :1, :]], axis=1)
    xw = jnp.concatenate([xpad[:, k:k + L, :] for k in range(3)], axis=-1)
    return jnp.einsum("blk,ko->blo", xw, w)


def time_delay_agg_inference(values, corr, factor):
    # values, corr: [B, H, C, L]; vectorized over top_k (one gather, one sum).
    B, H, C, L = values.shape
    top_k = int(factor * math.log(L))
    mean_value = jnp.mean(jnp.mean(corr, axis=1), axis=1)        # [B, L]
    weights, delay = jax.lax.top_k(mean_value, top_k)            # [B, top_k]
    tmp_corr = jax.nn.softmax(weights, axis=-1)                  # [B, top_k]
    init_index = jnp.arange(L, dtype=jnp.int32)
    idx = init_index[None, None, :] + delay[:, :, None].astype(jnp.int32)  # [B,K,L]
    idx = jnp.broadcast_to(idx[:, :, None, None, :], (B, top_k, H, C, L))
    tmp_values = jnp.concatenate([values, values], axis=-1)      # [B, H, C, 2L]
    patterns = jnp.take_along_axis(tmp_values[:, None], idx, axis=-1)  # [B,K,H,C,L]
    return jnp.sum(patterns * tmp_corr[:, :, None, None, None], axis=1)


def auto_correlation(q_t, k_t, v_t, factor):
    # TODO(synk): rfft/irfft + top-k gather have no Pallas TPU equivalent; plain JAX.
    # q_t: [B, H, E, L]; k_t, v_t: [B, H, E, S] -> output [B, H, E, L]
    L = q_t.shape[-1]
    S = k_t.shape[-1]
    if L > S:
        zpad = jnp.zeros(k_t.shape[:-1] + (L - S,), q_t.dtype)
        k_t = jnp.concatenate([k_t, zpad], axis=-1)
        v_t = jnp.concatenate([v_t, zpad], axis=-1)
    elif L < S:
        k_t = k_t[..., :L]
        v_t = v_t[..., :L]
    q_fft = jnp.fft.rfft(q_t, axis=-1)
    k_fft = jnp.fft.rfft(k_t, axis=-1)
    corr = jnp.fft.irfft(q_fft * jnp.conj(k_fft), n=L, axis=-1)  # [B, H, E, L]
    return time_delay_agg_inference(v_t, corr, factor)


def autocorrelation_values(q_in, k_in, v_in, p, n_heads, factor):
    """q/k/v projections + FFT autocorrelation. Returns pre-out-projection
    values [B, L, D]; the out projection (wo) is fused downstream."""
    B, L, D = q_in.shape
    S = k_in.shape[1]
    H = n_heads
    E = D // H
    if "wqkv" in p:
        # self-attention: fused q/k/v projection (one [D, 3D] matmul),
        # single transpose into the [B, H, E, L] FFT layout.
        qkv = pallas_linear(q_in.reshape(B * L, D), p["wqkv"], p["bqkv"])
        qkv = jnp.transpose(qkv.reshape(B, L, 3, H, E), (2, 0, 3, 4, 1))
        q_t, k_t, v_t = qkv[0], qkv[1], qkv[2]                 # [B, H, E, L]
    else:
        # cross-attention: q separate, fused k/v (one [D, 2D] matmul)
        q = pallas_linear(q_in.reshape(B * L, D), p["wq"], p["bq"])
        q_t = jnp.transpose(q.reshape(B, L, H, E), (0, 2, 3, 1))
        kv = pallas_linear(k_in.reshape(B * S, D), p["wkv"], p["bkv"])
        kv = jnp.transpose(kv.reshape(B, S, 2, H, E), (2, 0, 3, 4, 1))
        k_t, v_t = kv[0], kv[1]                                # [B, H, E, S]
    V = auto_correlation(q_t, k_t, v_t, factor)                # [B, H, E, L]
    return jnp.transpose(V, (0, 3, 1, 2)).reshape(B, L, D)


def encoder_layer(x, p, cfg):
    k = cfg["moving_avg"]
    attn_val = autocorrelation_values(x, x, x, p["attn"],
                                      cfg["n_heads"], cfg["factor"])
    # fused: wo projection + residual add + series_decomp
    x, _ = proj_res_decomp(attn_val, x, p["attn"]["wo"], p["attn"]["bo"], k)
    # fused: conv1 -> relu -> conv2 + residual add + series_decomp
    res, _ = ffn_res_decomp(x, p["w1"], p["w2"], k)
    return res


def encoder(x, p, cfg):
    for lp in p["layers"]:
        x = encoder_layer(x, lp, cfg)
    return my_layernorm(x, p["norm_g"], p["norm_b"])


def decoder_layer(x, cross, p, cfg):
    k = cfg["moving_avg"]
    v1 = autocorrelation_values(x, x, x, p["self_attn"],
                                cfg["n_heads"], cfg["factor"])
    x, trend1 = proj_res_decomp(v1, x, p["self_attn"]["wo"],
                                p["self_attn"]["bo"], k)
    v2 = autocorrelation_values(x, cross, cross, p["cross_attn"],
                                cfg["n_heads"], cfg["factor"])
    x, trend2 = proj_res_decomp(v2, x, p["cross_attn"]["wo"],
                                p["cross_attn"]["bo"], k)
    x, trend3 = ffn_res_decomp(x, p["w1"], p["w2"], k)
    residual_trend = trend1 + trend2 + trend3
    # d_model -> c_out (c_out=4: too narrow for a useful MXU tile -> plain XLA)
    residual_trend = circular_conv3_jax(residual_trend, p["trend_w"])
    return x, residual_trend


def decoder(x, cross, trend, p, cfg):
    for lp in p["layers"]:
        x, rt = decoder_layer(x, cross, lp, cfg)
        trend = trend + rt
    x = my_layernorm(x, p["norm_g"], p["norm_b"])
    # final projection d_model -> c_out (c_out=4 lanes: keep in XLA)
    x = jnp.einsum("bld,dc->blc", x, p["proj_w"]) + p["proj_b"]
    return x, trend


def model_forward(params, cfg, x_enc, x_mark_enc, x_dec, x_mark_dec):
    pred_len, label_len = cfg["pred_len"], cfg["label_len"]
    B = x_enc.shape[0]
    C = x_dec.shape[2]
    mean = jnp.mean(x_enc, axis=1, keepdims=True)
    mean = jnp.broadcast_to(mean, (B, pred_len, x_enc.shape[2]))
    zeros = jnp.zeros((B, pred_len, C), x_enc.dtype)
    seasonal_init, trend_init = series_decomp(x_enc, cfg["moving_avg"])
    trend_init = jnp.concatenate([trend_init[:, -label_len:, :], mean], axis=1)
    seasonal_init = jnp.concatenate([seasonal_init[:, -label_len:, :], zeros], axis=1)

    enc_out = data_embedding(x_enc, x_mark_enc, params["enc_emb"])
    enc_out = encoder(enc_out, params["encoder"], cfg)

    dec_out = data_embedding(seasonal_init, x_mark_dec, params["dec_emb"])
    seasonal_part, trend_part = decoder(dec_out, enc_out, trend_init,
                                        params["decoder"], cfg)
    dec_out = trend_part + seasonal_part
    return dec_out[:, -pred_len:, :]


# ----------------------------------------------------------------------------
# Deterministic parameter init (matmul weights stored in bf16, biases f32)
# ----------------------------------------------------------------------------

class ParamInit:
    def __init__(self, key):
        self.key = key

    def normal(self, shape, scale=0.05):
        self.key, sub = jax.random.split(self.key)
        return scale * jax.random.normal(sub, shape, dtype=jnp.float32)


def init_params(cfg, pi, mark_dim=4):
    D, F_, C_out = cfg["d_model"], cfg["d_ff"], cfg["c_out"]
    bf16 = jnp.bfloat16

    def self_attn_params():
        return {
            "wqkv": pi.normal((D, 3 * D)).astype(bf16), "bqkv": pi.normal((3 * D,)),
            "wo": pi.normal((D, D)).astype(bf16), "bo": pi.normal((D,)),
        }

    def cross_attn_params():
        return {
            "wq": pi.normal((D, D)).astype(bf16), "bq": pi.normal((D,)),
            "wkv": pi.normal((D, 2 * D)).astype(bf16), "bkv": pi.normal((2 * D,)),
            "wo": pi.normal((D, D)).astype(bf16), "bo": pi.normal((D,)),
        }

    params = {
        "enc_emb": {"tok_w": pi.normal((3 * cfg["enc_in"], D)),
                    "time_w": pi.normal((mark_dim, D))},
        "dec_emb": {"tok_w": pi.normal((3 * cfg["dec_in"], D)),
                    "time_w": pi.normal((mark_dim, D))},
        "encoder": {
            "layers": [{"attn": self_attn_params(),
                        "w1": pi.normal((D, F_)).astype(bf16),
                        "w2": pi.normal((F_, D)).astype(bf16)}
                       for _ in range(cfg["e_layers"])],
            "norm_g": jnp.ones((D,), jnp.float32),
            "norm_b": jnp.zeros((D,), jnp.float32),
        },
        "decoder": {
            "layers": [{"self_attn": self_attn_params(),
                        "cross_attn": cross_attn_params(),
                        "w1": pi.normal((D, F_)).astype(bf16),
                        "w2": pi.normal((F_, D)).astype(bf16),
                        "trend_w": pi.normal((3 * D, C_out))}
                       for _ in range(cfg["d_layers"])],
            "norm_g": jnp.ones((D,), jnp.float32),
            "norm_b": jnp.zeros((D,), jnp.float32),
            "proj_w": pi.normal((D, C_out)),
            "proj_b": pi.normal((C_out,)),
        },
    }
    return params


# ----------------------------------------------------------------------------
# Main
# ----------------------------------------------------------------------------

if __name__ == "__main__":
    cfg = dict(seq_len=16, label_len=8, pred_len=8,
               enc_in=4, dec_in=4, c_out=4,
               d_model=32, n_heads=4, d_ff=64,
               e_layers=1, d_layers=1,
               moving_avg=5, factor=1,
               dropout=0.0, activation="relu", output_attention=False)

    B = 2
    L_dec = cfg["label_len"] + cfg["pred_len"]
    key = jax.random.PRNGKey(0)
    k1, k2, k3, k4 = jax.random.split(key, 4)
    x_enc = jax.random.normal(k1, (B, cfg["seq_len"], cfg["enc_in"]), jnp.float32)
    x_mark_enc = jax.random.normal(k2, (B, cfg["seq_len"], 4), jnp.float32)
    x_dec = jax.random.normal(k3, (B, L_dec, cfg["dec_in"]), jnp.float32)
    x_mark_dec = jax.random.normal(k4, (B, L_dec, 4), jnp.float32)

    params = init_params(cfg, ParamInit(jax.random.PRNGKey(1)))

    out = model_forward(params, cfg, x_enc, x_mark_enc, x_dec, x_mark_dec)
    out = jax.block_until_ready(out)

    assert out.shape == (B, cfg["pred_len"], cfg["c_out"]), out.shape
    assert bool(jnp.all(jnp.isfinite(out)))
    print("KERNEL_OK")
</pallas_src>

<mosaic_0001>
module attributes {stable_mosaic.version = 11 : i64} {
  func.func @_decomp_kernel(%arg0: i32, %arg1: memref<2x16x4xf32, #tpu.memory_space<vmem>>, %arg2: memref<2x16x4xf32, #tpu.memory_space<vmem>>, %arg3: memref<2x16x4xf32, #tpu.memory_space<vmem>>) attributes {dimension_semantics = [#tpu.dimension_semantics<arbitrary>], iteration_bounds = array<i64: 1>, scalar_prefetch = 0 : i64, scratch_operands = 0 : i64, tpu.core_type = #tpu.core_type<tc>, window_params = [{pipeline_mode = #tpu.pipeline_mode<synchronous>, transform_indices = @transform_0, window_bounds = array<i64: 2, 16, 4>}, {pipeline_mode = #tpu.pipeline_mode<synchronous>, transform_indices = @transform_1, window_bounds = array<i64: 2, 16, 4>}, {pipeline_mode = #tpu.pipeline_mode<synchronous>, transform_indices = @transform_2, window_bounds = array<i64: 2, 16, 4>}]} {
    %c0 = arith.constant 0 : index
    %c0_0 = arith.constant 0 : index
    %c0_1 = arith.constant 0 : index
    %0 = vector.load %arg1[%c0, %c0_0, %c0_1] : memref<2x16x4xf32, #tpu.memory_space<vmem>>, vector<1x16x4xf32>
    %1 = vector.shape_cast %0 : vector<1x16x4xf32> to vector<16x4xf32>
    %2 = vector.extract_strided_slice %1 {offsets = [0, 0], sizes = [1, 4], strides = [1, 1]} : vector<16x4xf32> to vector<1x4xf32>
    %3 = vector.extract_strided_slice %1 {offsets = [15, 0], sizes = [1, 4], strides = [1, 1]} : vector<16x4xf32> to vector<1x4xf32>
    %4 = tpu.concatenate %2, %2, %1, %3, %3 in 0 : vector<1x4xf32>, vector<1x4xf32>, vector<16x4xf32>, vector<1x4xf32>, vector<1x4xf32> -> vector<20x4xf32>
    %5 = vector.extract_strided_slice %4 {offsets = [0, 0], sizes = [16, 4], strides = [1, 1]} : vector<20x4xf32> to vector<16x4xf32>
    %6 = vector.extract_strided_slice %4 {offsets = [1, 0], sizes = [16, 4], strides = [1, 1]} : vector<20x4xf32> to vector<16x4xf32>
    %7 = arith.addf %5, %6 : vector<16x4xf32>
    %8 = vector.extract_strided_slice %4 {offsets = [2, 0], sizes = [16, 4], strides = [1, 1]} : vector<20x4xf32> to vector<16x4xf32>
    %9 = arith.addf %7, %8 : vector<16x4xf32>
    %10 = vector.extract_strided_slice %4 {offsets = [3, 0], sizes = [16, 4], strides = [1, 1]} : vector<20x4xf32> to vector<16x4xf32>
    %11 = arith.addf %9, %10 : vector<16x4xf32>
    %12 = vector.extract_strided_slice %4 {offsets = [4, 0], sizes = [16, 4], strides = [1, 1]} : vector<20x4xf32> to vector<16x4xf32>
    %13 = arith.addf %11, %12 : vector<16x4xf32>
    %cst = arith.constant 2.000000e-01 : f32
    %14 = vector.broadcast %cst : f32 to vector<16x4xf32>
    %15 = arith.mulf %13, %14 : vector<16x4xf32>
    %16 = arith.subf %1, %15 : vector<16x4xf32>
    %c0_2 = arith.constant 0 : index
    %c0_3 = arith.constant 0 : index
    %c0_4 = arith.constant 0 : index
    %17 = vector.load %arg2[%c0_2, %c0_3, %c0_4] : memref<2x16x4xf32, #tpu.memory_space<vmem>>, vector<1x16x4xf32>
    %18 = vector.shape_cast %17 : vector<1x16x4xf32> to vector<16x4xf32>
    %19 = vector.shape_cast %16 : vector<16x4xf32> to vector<1x16x4xf32>
    tpu.vector_store %arg2[%c0_2, %c0_3, %c0_4], %19 {strides = array<i32>} : memref<2x16x4xf32, #tpu.memory_space<vmem>>, vector<1x16x4xf32>,
    %c0_5 = arith.constant 0 : index
    %c0_6 = arith.constant 0 : index
    %c0_7 = arith.constant 0 : index
    %20 = vector.load %arg3[%c0_5, %c0_6, %c0_7] : memref<2x16x4xf32, #tpu.memory_space<vmem>>, vector<1x16x4xf32>
    %21 = vector.shape_cast %20 : vector<1x16x4xf32> to vector<16x4xf32>
    %22 = vector.shape_cast %15 : vector<16x4xf32> to vector<1x16x4xf32>
    tpu.vector_store %arg3[%c0_5, %c0_6, %c0_7], %22 {strides = array<i32>} : memref<2x16x4xf32, #tpu.memory_space<vmem>>, vector<1x16x4xf32>,
    %c1 = arith.constant 1 : index
    %c0_8 = arith.constant 0 : index
    %c0_9 = arith.constant 0 : index
    %23 = vector.load %arg1[%c1, %c0_8, %c0_9] : memref<2x16x4xf32, #tpu.memory_space<vmem>>, vector<1x16x4xf32>
    %24 = vector.shape_cast %23 : vector<1x16x4xf32> to vector<16x4xf32>
    %25 = vector.extract_strided_slice %24 {offsets = [0, 0], sizes = [1, 4], strides = [1, 1]} : vector<16x4xf32> to vector<1x4xf32>
    %26 = vector.extract_strided_slice %24 {offsets = [15, 0], sizes = [1, 4], strides = [1, 1]} : vector<16x4xf32> to vector<1x4xf32>
    %27 = tpu.concatenate %25, %25, %24, %26, %26 in 0 : vector<1x4xf32>, vector<1x4xf32>, vector<16x4xf32>, vector<1x4xf32>, vector<1x4xf32> -> vector<20x4xf32>
    %28 = vector.extract_strided_slice %27 {offsets = [0, 0], sizes = [16, 4], strides = [1, 1]} : vector<20x4xf32> to vector<16x4xf32>
    %29 = vector.extract_strided_slice %27 {offsets = [1, 0], sizes = [16, 4], strides = [1, 1]} : vector<20x4xf32> to vector<16x4xf32>
    %30 = arith.addf %28, %29 : vector<16x4xf32>
    %31 = vector.extract_strided_slice %27 {offsets = [2, 0], sizes = [16, 4], strides = [1, 1]} : vector<20x4xf32> to vector<16x4xf32>
    %32 = arith.addf %30, %31 : vector<16x4xf32>
    %33 = vector.extract_strided_slice %27 {offsets = [3, 0], sizes = [16, 4], strides = [1, 1]} : vector<20x4xf32> to vector<16x4xf32>
    %34 = arith.addf %32, %33 : vector<16x4xf32>
    %35 = vector.extract_strided_slice %27 {offsets = [4, 0], sizes = [16, 4], strides = [1, 1]} : vector<20x4xf32> to vector<16x4xf32>
    %36 = arith.addf %34, %35 : vector<16x4xf32>
    %cst_10 = arith.constant 2.000000e-01 : f32
    %37 = vector.broadcast %cst_10 : f32 to vector<16x4xf32>
    %38 = arith.mulf %36, %37 : vector<16x4xf32>
    %39 = arith.subf %24, %38 : vector<16x4xf32>
    %c1_11 = arith.constant 1 : index
    %c0_12 = arith.constant 0 : index
    %c0_13 = arith.constant 0 : index
    %40 = vector.load %arg2[%c1_11, %c0_12, %c0_13] : memref<2x16x4xf32, #tpu.memory_space<vmem>>, vector<1x16x4xf32>
    %41 = vector.shape_cast %40 : vector<1x16x4xf32> to vector<16x4xf32>
    %42 = vector.shape_cast %39 : vector<16x4xf32> to vector<1x16x4xf32>
    tpu.vector_store %arg2[%c1_11, %c0_12, %c0_13], %42 {strides = array<i32>} : memref<2x16x4xf32, #tpu.memory_space<vmem>>, vector<1x16x4xf32>,
    %c1_14 = arith.constant 1 : index
    %c0_15 = arith.constant 0 : index
    %c0_16 = arith.constant 0 : index
    %43 = vector.load %arg3[%c1_14, %c0_15, %c0_16] : memref<2x16x4xf32, #tpu.memory_space<vmem>>, vector<1x16x4xf32>
    %44 = vector.shape_cast %43 : vector<1x16x4xf32> to vector<16x4xf32>
    %45 = vector.shape_cast %38 : vector<16x4xf32> to vector<1x16x4xf32>
    tpu.vector_store %arg3[%c1_14, %c0_15, %c0_16], %45 {strides = array<i32>} : memref<2x16x4xf32, #tpu.memory_space<vmem>>, vector<1x16x4xf32>,
    return
  }
  func.func @transform_0(%arg0: i32) -> (i32, i32, i32) {
    %c0_i32 = arith.constant 0 : i32
    %c0_i32_0 = arith.constant 0 : i32
    %c0_i32_1 = arith.constant 0 : i32
    %c0_i32_2 = arith.constant 0 : i32
    return %c0_i32, %c0_i32_0, %c0_i32_1 : i32, i32, i32
  }
  func.func @transform_1(%arg0: i32) -> (i32, i32, i32) {
    %c0_i32 = arith.constant 0 : i32
    %c0_i32_0 = arith.constant 0 : i32
    %c0_i32_1 = arith.constant 0 : i32
    %c0_i32_2 = arith.constant 0 : i32
    return %c0_i32, %c0_i32_0, %c0_i32_1 : i32, i32, i32
  }
  func.func @transform_2(%arg0: i32) -> (i32, i32, i32) {
    %c0_i32 = arith.constant 0 : i32
    %c0_i32_0 = arith.constant 0 : i32
    %c0_i32_1 = arith.constant 0 : i32
    %c0_i32_2 = arith.constant 0 : i32
    return %c0_i32, %c0_i32_0, %c0_i32_1 : i32, i32, i32
  }
}

</mosaic_0001>

<bundles_post_ra>
// kernel: tpu_custom_call.1
= control target key start
LH: loop header
LB: loop body
LE: loop exit
PB: predicated region body
PF: predicated region fallthrough
CT: control target
= control target key end

     0   :  { %vm16_vm0 = vcmask 1041408   ;;  %vm27_vm1 = vcmask 1040384   ;;  %vm35_vm2 = vcmask 1046528   ;;  %vm45_vm3 = vcmask 1045504   ;;  %s276_s0 = inlined_call_operand.vmem [shape: f32[2,16,4], index: 0, kind: input, shape index: {}]   ;;  %s277_s2 = inlined_call_operand.vmem [shape: f32[2,16,4], index: 2, kind: output, shape index: {1}]   ;;  %s278_s1 = inlined_call_operand.vmem [shape: f32[2,16,4], index: 1, kind: output, shape index: {0}]  }
   0x1   :  { %v185_v0 = vld [vmem:[%s276_s0] sm:$0xff]  ;;  %v190_v1 = vld [vmem:[%s276_s0 + $0x8] sm:$0xff]  ;;  %vm55_vm4 = vcmask 1044480   ;;  %vm65_vm5 = vcmask 1043456   ;;  %v195_v2 = vld [vmem:[%s276_s0 + $0x18] sm:$0xff]  ;;  %vm31_vm6 = vcmask 1042432  }
   0x2   :  { %v13_v3 = vrot.slane %v185_v0, 7  ;;  %v17_v4 = vrot.slane %v185_v0, 6  ;;  %v18_v5 = vrot.slane %v190_v1, 6  ;;  %v23_v6 = vrot.slane %v190_v1, 5  ;;  %v212_v14 = vld [vmem:[%s276_s0 + $0x10] sm:$0xff] }
   0x3   :  { %v25_v7 = vrot.slane %v190_v1, 4  ;;  %v92_v8 = vrot.slane %v195_v2, 6  ;;  %v97_v9 = vrot.slane %v195_v2, 5  ;;  %v99_v10 = vrot.slane %v195_v2, 4 }
   0x4   :  { %v19_v11 = vsel %vm16_vm0, %v17_v4, %v18_v5  ;;  %v28_v12 = vsel %vm27_vm1, %v185_v0, %v13_v3  ;;  %v30_v13 = vsel %vm16_vm0, %v18_v5, %v23_v6  ;;  %v88_v25 = vrot.slane %v212_v14, 7 }
   0x5   :  { %v29_v15 = vsel %vm16_vm0, %v28_v12, %v17_v4  ;;  %v37_v16 = vrot.slane %v19_v11, 1  ;;  %v47_v17 = vrot.slane %v19_v11, 2  ;;  %v57_v18 = vrot.slane %v19_v11, 3 }
   0x6   :  { %v36_v19 = vrot.slane %v29_v15, 1  ;;  %v46_v20 = vrot.slane %v29_v15, 2  ;;  %v56_v21 = vrot.slane %v29_v15, 3  ;;  %v66_v22 = vrot.slane %v29_v15, 4 }
   0x7   :  { %v67_v23 = vrot.slane %v19_v11, 4  ;;  %v32_v24 = vsel %vm31_vm6, %v30_v13, %v25_v7  ;;  %v91_v26 = vrot.slane %v212_v14, 6  ;;  %v101_v38 = vsel %vm27_vm1, %v212_v14, %v88_v25 }
   0x8   :  { %v38_v27 = vsel %vm35_vm2, %v36_v19, %v37_v16  ;;  %v48_v28 = vsel %vm45_vm3, %v46_v20, %v47_v17  ;;  %v58_v29 = vsel %vm55_vm4, %v56_v21, %v57_v18  ;;  %v39_v30 = vrot.slane %v32_v24, 1 }
   0x9   :  { %v43_v31 = vadd.f32 %v38_v27, %v29_v15  ;;  %v68_v32 = vsel %vm65_vm5, %v66_v22, %v67_v23  ;;  %v49_v33 = vrot.slane %v32_v24, 2  ;;  %v59_v34 = vrot.slane %v32_v24, 3 }
   0xa   :  { %v40_v35 = vsel %vm35_vm2, %v37_v16, %v39_v30  ;;  %v69_v36 = vrot.slane %v32_v24, 4  ;;  %v93_v37 = vsel %vm16_vm0, %v91_v26, %v92_v8  ;;  %v102_v44 = vsel %vm16_vm0, %v101_v38, %v91_v26 }
   0xb   :  { %v53_v39 = vadd.f32 %v48_v28, %v43_v31  ;;  %v44_v40 = vadd.f32 %v40_v35, %v19_v11  ;;  %v50_v41 = vsel %vm45_vm3, %v47_v17, %v49_v33  ;;  %v60_v42 = vsel %vm55_vm4, %v57_v18, %v59_v34 }
   0xc   :  { %v70_v43 = vsel %vm65_vm5, %v67_v23, %v69_v36  ;;  %v108_v45 = vrot.slane %v93_v37, 1  ;;  %v117_v46 = vrot.slane %v93_v37, 2  ;;  %v107_v49 = vrot.slane %v102_v44, 1 }
   0xd   :  { %v63_v47 = vadd.f32 %v58_v29, %v53_v39  ;;  %v54_v48 = vadd.f32 %v50_v41, %v44_v40  ;;  %v116_v50 = vrot.slane %v102_v44, 2  ;;  %v125_v51 = vrot.slane %v102_v44, 3 }
   0xe   :  { %v126_v52 = vrot.slane %v93_v37, 3  ;;  %v134_v53 = vrot.slane %v102_v44, 4  ;;  %v135_v54 = vrot.slane %v93_v37, 4  ;;  %v109_v57 = vsel %vm35_vm2, %v107_v49, %v108_v45 }
   0xf   :  { %v73_v55 = vadd.f32 %v68_v32, %v63_v47  ;;  %v64_v56 = vadd.f32 %v60_v42, %v54_v48  ;;  %v118_v58 = vsel %vm45_vm3, %v116_v50, %v117_v46  ;;  %vm79_vm7 = vcmask 31744  }
  0x10   :  { %v114_v59 = vadd.f32 %v109_v57, %v102_v44  ;;  %v103_v60 = vsel %vm16_vm0, %v92_v8, %v97_v9  ;;  %v127_v63 = vsel %vm55_vm4, %v125_v51, %v126_v52  ;;  %v136_v8 = vsel %vm65_vm5, %v134_v53, %v135_v54 }
  0x11   :  { %v75_v61 = vmul.f32 0.2, %v73_v55  ;;  %v74_v62 = vadd.f32 %v70_v43, %v64_v56  ;;  %v104_v3 = vsel %vm31_vm6, %v103_v60, %v99_v10 }
  0x12   :  { %v123_v4 = vadd.f32 %v118_v58, %v114_v59  ;;  %v110_v5 = vrot.slane %v104_v3, 1  ;;  %v119_v6 = vrot.slane %v104_v3, 2  ;;  %v128_v7 = vrot.slane %v104_v3, 3 }
  0x13   :  { %v77_v11 = vsub.f32 %v185_v0, %v75_v61  ;;  %v76_v12 = vmul.f32 0.2, %v74_v62  ;;  %82 = vst.msk [vmem:[%s277_s2] sm:$0xff] %vm79_vm7, %v75_v61  ;;  %v137_v10 = vrot.slane %v104_v3, 4 }
  0x14   :  { %v132_v9 = vadd.f32 %v127_v63, %v123_v4  ;;  %v111_v13 = vsel %vm35_vm2, %v108_v45, %v110_v5  ;;  %v120_v15 = vsel %vm45_vm3, %v117_v46, %v119_v6  ;;  %v129_v18 = vsel %vm55_vm4, %v126_v52, %v128_v7 }
  0x15   :  { %80 = vst.msk [vmem:[%s278_s1] sm:$0xff] %vm79_vm7, %v77_v11  ;;  %v78_v0 = vsub.f32 %v190_v1, %v76_v12  ;;  %83 = vst.msk [vmem:[%s277_s2 + $0x8] sm:$0xff] %vm79_vm7, %v76_v12  ;;  %v115_v16 = vadd.f32 %v111_v13, %v93_v37  ;;  %v138_v21 = vsel %vm65_vm5, %v135_v54, %v137_v10 }
  0x16   :  { %v141_v17 = vadd.f32 %v136_v8, %v132_v9 }
  0x17   :  { %81 = vst.msk [vmem:[%s278_s1 + $0x8] sm:$0xff] %vm79_vm7, %v78_v0  ;;  %v124_v19 = vadd.f32 %v120_v15, %v115_v16 }
  0x18   :  { %v143_v20 = vmul.f32 0.2, %v141_v17 }
  0x19   :  { %v133_v22 = vadd.f32 %v129_v18, %v124_v19 }
  0x1a   :  { %v145_v1 = vsub.f32 %v212_v14, %v143_v20  ;;  %165 = vst.msk [vmem:[%s277_s2 + $0x10] sm:$0xff] %vm79_vm7, %v143_v20 }
  0x1b   :  { %v142_v23 = vadd.f32 %v138_v21, %v133_v22 }
  0x1c   :  { %163 = vst.msk [vmem:[%s278_s1 + $0x10] sm:$0xff] %vm79_vm7, %v145_v1 }
  0x1d   :  { %v144_v24 = vmul.f32 0.2, %v142_v23 }
  0x1f   :  { %v146_v25 = vsub.f32 %v195_v2, %v144_v24  ;;  %166 = vst.msk [vmem:[%s277_s2 + $0x18] sm:$0xff] %vm79_vm7, %v144_v24 }
  0x21   :  { %164 = vst.msk [vmem:[%s278_s1 + $0x18] sm:$0xff] %vm79_vm7, %v146_v25 }

</bundles_post_ra>
